<compile_context>
chip_gen: v6e
topology: v6e:2x2x1
jax: 0.10.0
libtpu: 0.0.40
codegen_flags: <defaults>
</compile_context>

<pallas_src>
import functools

import jax
import jax.numpy as jnp
from jax import lax
from jax.experimental import pallas as pl
from jax.experimental.pallas import tpu as pltpu


# Finite "minus infinity" for masked logits.  NOTE: must be a *Python* float —
# a jnp scalar here becomes a captured traced constant inside the kernel and
# pallas_call rejects it ("captures constants [f32[]]").
# Invariant: every tile contains at least one valid row (only the last tile is
# padded), so m_new never stays at the sentinel and alpha/p stay well-defined.
_NEG_INF = -1e30


def _att_kernel(x_ref, w_emb_ref, b_emb_ref, w_tr_ref,
                m_ref, a_ref, e_ref,
                max_sc, sum_sc, tmax_sc,
                *, n_valid, tile_n, matmul_dtype, needs_mask):
    i = pl.program_id(0)
    n_steps = pl.num_programs(0)

    # ---- step 0: init resident accumulator + running softmax stats --------
    @pl.when(i == 0)
    def _init():
        m_ref[...] = jnp.zeros_like(m_ref)
        max_sc[...] = jnp.full_like(max_sc, _NEG_INF)
        sum_sc[...] = jnp.zeros_like(sum_sc)

    x_mm = x_ref[...].astype(matmul_dtype)              # (TN, L)

    # E = tanh(x @ W_emb + b): MXU matmul (f32 accumulation) + EUP tanh.
    # W_emb arrives already in matmul_dtype (pre-cast in the wrapper).
    e = jnp.tanh(
        jnp.dot(x_mm, w_emb_ref[...], preferred_element_type=jnp.float32)
        + b_emb_ref[...]
    )                                                   # (TN, D) f32
    e_ref[...] = e.astype(e_ref.dtype)

    # V as a lane-dense row: (1, D) x (TN, D)^T -> (1, TN).  NT matmul on the
    # MXU (f32, tiny); output is lane-major so the A stores are full-width.
    v = lax.dot_general(
        w_tr_ref[...], e,
        dimension_numbers=(((1,), (1,)), ((), ())),
        preferred_element_type=jnp.float32)             # (1, TN)

    if needs_mask:
        # Emitted only when N % tile_n != 0 (Python-level constant).  Only
        # the last tile actually has padded rows; elsewhere the select is a
        # data no-op costing a couple of VPU ops per step.
        row_ids = i * tile_n + lax.broadcasted_iota(jnp.int32, (1, tile_n), 1)
        v = jnp.where(row_ids < n_valid, v, _NEG_INF)

    # ---- online (flash-style) softmax update over the N axis --------------
    m_old = max_sc[...]                                            # (1, 1)
    m_new = jnp.maximum(m_old, jnp.max(v, axis=1, keepdims=True))  # (1, 1)
    alpha = jnp.exp(m_old - m_new)                                 # rescale
    p = jnp.exp(v - m_new)                                         # (1, TN)
    sum_sc[...] = alpha * sum_sc[...] + jnp.sum(p, axis=1, keepdims=True)
    max_sc[...] = m_new

    # Stash un-normalized probabilities + this tile's running max; finalize
    # rescales each tile row with one exp per tile (instead of exp over all N).
    a_ref[pl.ds(i, 1), :] = p
    tmax_sc[pl.ds(i, 1), :] = m_new

    # M accumulation on the MXU: (1, TN) @ (TN, L) -> (1, L).
    m_part = jnp.dot(p.astype(matmul_dtype), x_mm,
                     preferred_element_type=jnp.float32)
    m_ref[...] = alpha * m_ref[...] + m_part

    # ---- last step: normalize M and A --------------------------------------
    @pl.when(i == n_steps - 1)
    def _finalize():
        inv_sum = pl.reciprocal(sum_sc[...], approx=False)         # (1, 1)
        m_ref[...] = m_ref[...] * inv_sum
        # A_t = p_t * exp(m_t - m_final) / sum_final  (num_tiles exps total).
        scale = jnp.exp(tmax_sc[...] - max_sc[...]) * inv_sum      # (T, 1)
        a_ref[...] = a_ref[...] * scale


def _vmem_budget_bytes():
    """Generation-aware VMEM budgets: ~1/2 of per-core capacity for tile
    sizing, ~3/4 for the compiler limit (v5e/v6e 128 MiB -> 64/96 MiB;
    v7x 64 MiB per-TC -> 32/48 MiB)."""
    try:
        cap = int(pltpu.get_tpu_info().vmem_capacity_bytes)
    except Exception:
        cap = 64 * 1024 * 1024          # conservative fallback (v7x per-TC)
    return cap // 2, (cap * 3) // 4


def _choose_tile_n(n, l, d, *, budget_bytes, mm_bytes, e_bytes):
    """Largest lane-aligned (multiple of 128) N-tile whose double-buffered
    x / E tiles plus ALL resident blocks (weights, M row, A block, tile-max
    scratch) fit the generation-aware VMEM budget."""
    tile_n = 128
    for cand in (256, 512, 1024, 2048, 4096, 8192):
        if cand > n:
            break
        num_tiles = pl.cdiv(n, cand)
        need = (2 * cand * l * 4            # double-buffered x tile (f32)
                + 2 * cand * d * e_bytes    # double-buffered E tile
                + l * d * mm_bytes          # resident W_emb (matmul dtype)
                + 4 * (2 * d + l)           # b_emb, w_tr, M accumulator row
                + 4 * num_tiles * cand      # resident A (p) block
                + 4 * num_tiles)            # per-tile max scratch
        if need > budget_bytes:
            break
        tile_n = cand
    return tile_n


def att_forward(x, w_emb, b_emb, w_tr, *, matmul_dtype=jnp.bfloat16,
                e_dtype=jnp.float32):
    """Pallas forward of ATT.  x: (N, L) f32.

    Returns (M (1, L), A (1, N), E (N, D)), matching the PyTorch module.
    matmul_dtype=jnp.bfloat16 (default) runs the MXU matmuls on bf16 inputs
    with f32 accumulation (HBM-bound regime on all generations); pass
    jnp.float32 for a bit-tighter numerical match.  e_dtype=jnp.bfloat16
    halves the E writeback traffic if downstream tolerates it."""
    n, l = x.shape
    d = w_emb.shape[1]

    budget, vmem_limit = _vmem_budget_bytes()
    mm_bytes = 2 if matmul_dtype in (jnp.bfloat16, jnp.float16) else 4
    e_bytes = 2 if e_dtype in (jnp.bfloat16, jnp.float16) else 4
    tile_n = _choose_tile_n(n, l, d, budget_bytes=budget,
                            mm_bytes=mm_bytes, e_bytes=e_bytes)
    num_tiles = pl.cdiv(n, tile_n)
    n_pad = num_tiles * tile_n
    if n_pad != n:
        x = jnp.pad(x, ((0, n_pad - n), (0, 0)))   # padded rows masked in-kernel

    # Pre-cast grid-invariant weights once in the wrapper: removes the
    # per-step VALU cast of W_emb and halves its resident VMEM footprint.
    w_emb_mm = w_emb.astype(matmul_dtype)
    b_row = b_emb.reshape(1, d).astype(jnp.float32)
    w_tr_row = w_tr.reshape(1, d).astype(jnp.float32)

    kernel = functools.partial(
        _att_kernel, n_valid=n, tile_n=tile_n, matmul_dtype=matmul_dtype,
        needs_mask=(n_pad != n))

    m, a_tiles, e_pad = pl.pallas_call(
        kernel,
        out_shape=(
            jax.ShapeDtypeStruct((1, l), jnp.float32),               # M
            jax.ShapeDtypeStruct((num_tiles, tile_n), jnp.float32),  # A (lane-dense)
            jax.ShapeDtypeStruct((n_pad, d), e_dtype),               # E
        ),
        grid_spec=pltpu.PrefetchScalarGridSpec(
            num_scalar_prefetch=0,
            grid=(num_tiles,),
            in_specs=[
                pl.BlockSpec((tile_n, l), lambda i: (i, 0)),   # x tile (pipelined)
                pl.BlockSpec((l, d), lambda i: (0, 0)),        # W_emb (resident)
                pl.BlockSpec((1, d), lambda i: (0, 0)),        # b_emb row (resident)
                pl.BlockSpec((1, d), lambda i: (0, 0)),        # w_tr row (resident)
            ],
            out_specs=(
                pl.BlockSpec((1, l), lambda i: (0, 0)),               # M accumulator
                pl.BlockSpec((num_tiles, tile_n), lambda i: (0, 0)),  # A probs (resident)
                pl.BlockSpec((tile_n, d), lambda i: (i, 0)),          # E tile writeback
            ),
            scratch_shapes=[
                pltpu.VMEM((1, 1), jnp.float32),          # running max
                pltpu.VMEM((1, 1), jnp.float32),          # running sum
                pltpu.VMEM((num_tiles, 1), jnp.float32),  # per-tile max
            ],
        ),
        compiler_params=pltpu.CompilerParams(
            dimension_semantics=("arbitrary",),    # online-softmax recurrence over N
            vmem_limit_bytes=int(vmem_limit),
        ),
    )(x, w_emb_mm, b_row, w_tr_row)

    # Layout glue outside the kernel (cheap XLA reshapes / slices).
    a_row = a_tiles.reshape(1, n_pad)[:, :n]   # == .view(1, -1) in PyTorch
    e = e_pad[:n]
    return m, a_row, e


def att_reference(x, w_emb, b_emb, w_tr):
    hi = jax.lax.Precision.HIGHEST
    e = jnp.tanh(jnp.dot(x, w_emb, precision=hi) + b_emb)
    v = jnp.dot(e, w_tr, precision=hi)
    a = jax.nn.softmax(v, axis=0).reshape(1, -1)
    m = jnp.dot(a, x, precision=hi)
    return m, a, e


def _check(m, a, e, ref, n, l, d, *, e_tol, m_tol, tag):
    m_want, a_want, e_want = ref
    assert m.shape == (1, l) and a.shape == (1, n) and e.shape == (n, d)
    assert jnp.allclose(e, e_want, atol=e_tol, rtol=1e-2), \
        f"[{tag}] E mismatch: {jnp.max(jnp.abs(e - e_want))}"
    assert jnp.allclose(a, a_want, atol=1e-3, rtol=1e-2), \
        f"[{tag}] A mismatch: {jnp.max(jnp.abs(a - a_want))}"
    assert jnp.allclose(m, m_want, atol=m_tol, rtol=1e-2), \
        f"[{tag}] M mismatch: {jnp.max(jnp.abs(m - m_want))}"
    assert jnp.allclose(jnp.sum(a), 1.0, atol=1e-4), f"[{tag}] A does not sum to 1"


if __name__ == "__main__":
    # Module defaults: L=512 features, D=128 embedding.  N=200 instances so
    # the grid has 2 tiles (exercises online softmax, resident accumulators
    # and padded-row masking) while staying small.
    N, L, D = 200, 512, 128

    key = jax.random.PRNGKey(0)
    kx, kw1, kb1, kw2 = jax.random.split(key, 4)

    x = jax.random.normal(kx, (N, L), dtype=jnp.float32)

    bound1 = 1.0 / (L ** 0.5)
    w_emb = jax.random.uniform(kw1, (L, D), jnp.float32, -bound1, bound1)
    b_emb = jax.random.uniform(kb1, (D,), jnp.float32, -bound1, bound1)
    bound2 = 1.0 / (D ** 0.5)
    w_tr = jax.random.uniform(kw2, (D, 1), jnp.float32, -bound2, bound2)

    ref = att_reference(x, w_emb, b_emb, w_tr)

    # Default (bf16 MXU) path — looser tolerances for bf16 input rounding.
    m, a, e = att_forward(x, w_emb, b_emb, w_tr)
    jax.block_until_ready((m, a, e))
    _check(m, a, e, ref, N, L, D, e_tol=5e-2, m_tol=2e-2, tag="bf16")

    # f32 MXU path — tighter check of the kernel structure itself.
    m32, a32, e32 = att_forward(x, w_emb, b_emb, w_tr, matmul_dtype=jnp.float32)
    jax.block_until_ready((m32, a32, e32))
    _check(m32, a32, e32, ref, N, L, D, e_tol=1e-2, m_tol=1e-2, tag="f32")

    print("KERNEL_OK")
</pallas_src>

<mosaic_0001>
module attributes {stable_mosaic.version = 11 : i64} {
  func.func @_att_kernel(%arg0: i32, %arg1: memref<128x512xf32, #tpu.memory_space<vmem>>, %arg2: memref<512x128xbf16, #tpu.memory_space<vmem>>, %arg3: memref<1x128xf32, #tpu.memory_space<vmem>>, %arg4: memref<1x128xf32, #tpu.memory_space<vmem>>, %arg5: memref<1x512xf32, #tpu.memory_space<vmem>>, %arg6: memref<2x128xf32, #tpu.memory_space<vmem>>, %arg7: memref<128x128xf32, #tpu.memory_space<vmem>>, %arg8: memref<1x1xf32, #tpu.memory_space<vmem>>, %arg9: memref<1x1xf32, #tpu.memory_space<vmem>>, %arg10: memref<2x1xf32, #tpu.memory_space<vmem>>) attributes {dimension_semantics = [#tpu.dimension_semantics<arbitrary>], iteration_bounds = array<i64: 2>, scalar_prefetch = 0 : i64, scratch_operands = 3 : i64, tpu.core_type = #tpu.core_type<tc>, window_params = [{transform_indices = @transform_0, window_bounds = array<i64: 128, 512>}, {pipeline_mode = #tpu.pipeline_mode<synchronous>, transform_indices = @transform_1, window_bounds = array<i64: 512, 128>}, {pipeline_mode = #tpu.pipeline_mode<synchronous>, transform_indices = @transform_2, window_bounds = array<i64: 1, 128>}, {pipeline_mode = #tpu.pipeline_mode<synchronous>, transform_indices = @transform_3, window_bounds = array<i64: 1, 128>}, {pipeline_mode = #tpu.pipeline_mode<synchronous>, transform_indices = @transform_4, window_bounds = array<i64: 1, 512>}, {pipeline_mode = #tpu.pipeline_mode<synchronous>, transform_indices = @transform_5, window_bounds = array<i64: 2, 128>}, {transform_indices = @transform_6, window_bounds = array<i64: 128, 128>}]} {
    %c0_i32 = arith.constant 0 : i32
    %0 = arith.cmpi eq, %arg0, %c0_i32 : i32
    %1 = arith.extui %0 : i1 to i32
    %c0_i32_0 = arith.constant 0 : i32
    %2 = arith.cmpi ne, %1, %c0_i32_0 : i32
    scf.if %2 {
      %cst_30 = arith.constant 0.000000e+00 : f32
      %52 = vector.broadcast %cst_30 : f32 to vector<1x512xf32>
      %c0_31 = arith.constant 0 : index
      %c0_32 = arith.constant 0 : index
      %53 = vector.load %arg5[%c0_31, %c0_32] : memref<1x512xf32, #tpu.memory_space<vmem>>, vector<1x512xf32>
      tpu.vector_store %arg5[%c0_31, %c0_32], %52 {strides = array<i32>} : memref<1x512xf32, #tpu.memory_space<vmem>>, vector<1x512xf32>,
      %cst_33 = arith.constant -1.000000e+30 : f32
      %54 = vector.broadcast %cst_33 : f32 to vector<1x1xf32>
      %c0_34 = arith.constant 0 : index
      %c0_35 = arith.constant 0 : index
      %55 = vector.load %arg8[%c0_34, %c0_35] : memref<1x1xf32, #tpu.memory_space<vmem>>, vector<1x1xf32>
      tpu.vector_store %arg8[%c0_34, %c0_35], %54 {strides = array<i32>} : memref<1x1xf32, #tpu.memory_space<vmem>>, vector<1x1xf32>,
      %cst_36 = arith.constant 0.000000e+00 : f32
      %56 = vector.broadcast %cst_36 : f32 to vector<1x1xf32>
      %c0_37 = arith.constant 0 : index
      %c0_38 = arith.constant 0 : index
      %57 = vector.load %arg9[%c0_37, %c0_38] : memref<1x1xf32, #tpu.memory_space<vmem>>, vector<1x1xf32>
      tpu.vector_store %arg9[%c0_37, %c0_38], %56 {strides = array<i32>} : memref<1x1xf32, #tpu.memory_space<vmem>>, vector<1x1xf32>,
    } else {
    }
    %c0 = arith.constant 0 : index
    %c0_1 = arith.constant 0 : index
    %3 = vector.load %arg1[%c0, %c0_1] : memref<128x512xf32, #tpu.memory_space<vmem>>, vector<128x512xf32>
    %4 = arith.truncf %3 : vector<128x512xf32> to vector<128x512xbf16>
    %c0_2 = arith.constant 0 : index
    %c0_3 = arith.constant 0 : index
    %5 = vector.load %arg2[%c0_2, %c0_3] : memref<512x128xbf16, #tpu.memory_space<vmem>>, vector<512x128xbf16>
    %cst = arith.constant dense<0.000000e+00> : vector<128x128xf32>
    %6 = tpu.matmul %4, %5, %cst {dimension_numbers = #tpu.dot_dimension_numbers<[1], [0], [0], [1], [0, 0, 1, 1], [], []>} : vector<128x512xbf16>, vector<512x128xbf16>, vector<128x128xf32> -> vector<128x128xf32>
    %c0_4 = arith.constant 0 : index
    %c0_5 = arith.constant 0 : index
    %7 = vector.load %arg3[%c0_4, %c0_5] : memref<1x128xf32, #tpu.memory_space<vmem>>, vector<1x128xf32>
    %8 = vector.broadcast %7 : vector<1x128xf32> to vector<128x128xf32>
    %9 = arith.addf %6, %8 : vector<128x128xf32>
    %10 = math.tanh %9 : vector<128x128xf32>
    %c0_6 = arith.constant 0 : index
    %c0_7 = arith.constant 0 : index
    %11 = vector.load %arg7[%c0_6, %c0_7] : memref<128x128xf32, #tpu.memory_space<vmem>>, vector<128x128xf32>
    tpu.vector_store %arg7[%c0_6, %c0_7], %10 {strides = array<i32>} : memref<128x128xf32, #tpu.memory_space<vmem>>, vector<128x128xf32>,
    %c0_8 = arith.constant 0 : index
    %c0_9 = arith.constant 0 : index
    %12 = vector.load %arg4[%c0_8, %c0_9] : memref<1x128xf32, #tpu.memory_space<vmem>>, vector<1x128xf32>
    %cst_10 = arith.constant dense<0.000000e+00> : vector<1x128xf32>
    %13 = tpu.matmul %12, %10, %cst_10 {dimension_numbers = #tpu.dot_dimension_numbers<[1], [1], [0], [0], [0, 0, 1, 0], [], []>} : vector<1x128xf32>, vector<128x128xf32>, vector<1x128xf32> -> vector<1x128xf32>
    %c128_i32 = arith.constant 128 : i32
    %14 = arith.muli %arg0, %c128_i32 : i32
    %15 = tpu.iota {dimensions = array<i32: 1>} : vector<1x128xi32>
    %16 = vector.broadcast %14 : i32 to vector<1x128xi32>
    %17 = arith.addi %16, %15 : vector<1x128xi32>
    %c200_i32 = arith.constant 200 : i32
    %18 = vector.broadcast %c200_i32 : i32 to vector<1x128xi32>
    %19 = arith.cmpi slt, %17, %18 : vector<1x128xi32>
    %cst_11 = arith.constant -1.000000e+30 : f32
    %20 = vector.broadcast %cst_11 : f32 to vector<1x128xf32>
    %21 = arith.select %19, %13, %20 : vector<1x128xi1>, vector<1x128xf32>
    %c0_12 = arith.constant 0 : index
    %c0_13 = arith.constant 0 : index
    %22 = vector.load %arg8[%c0_12, %c0_13] : memref<1x1xf32, #tpu.memory_space<vmem>>, vector<1x1xf32>
    %cst_14 = arith.constant dense<0xFF800000> : vector<1xf32>
    %23 = vector.multi_reduction <maximumf>, %21, %cst_14 [1] : vector<1x128xf32> to vector<1xf32>
    %24 = vector.shape_cast %23 : vector<1xf32> to vector<1x1xf32>
    %25 = arith.maximumf %22, %24 : vector<1x1xf32>
    %26 = arith.subf %22, %25 : vector<1x1xf32>
    %27 = math.exp %26 : vector<1x1xf32>
    %28 = vector.broadcast %25 : vector<1x1xf32> to vector<1x128xf32>
    %29 = arith.subf %21, %28 : vector<1x128xf32>
    %30 = math.exp %29 : vector<1x128xf32>
    %c0_15 = arith.constant 0 : index
    %c0_16 = arith.constant 0 : index
    %31 = vector.load %arg9[%c0_15, %c0_16] : memref<1x1xf32, #tpu.memory_space<vmem>>, vector<1x1xf32>
    %32 = arith.mulf %27, %31 : vector<1x1xf32>
    %cst_17 = arith.constant dense<0.000000e+00> : vector<1xf32>
    %33 = vector.multi_reduction <add>, %30, %cst_17 [1] : vector<1x128xf32> to vector<1xf32>
    %34 = vector.shape_cast %33 : vector<1xf32> to vector<1x1xf32>
    %35 = arith.addf %32, %34 : vector<1x1xf32>
    %c0_18 = arith.constant 0 : index
    %c0_19 = arith.constant 0 : index
    %36 = vector.load %arg9[%c0_18, %c0_19] : memref<1x1xf32, #tpu.memory_space<vmem>>, vector<1x1xf32>
    tpu.vector_store %arg9[%c0_18, %c0_19], %35 {strides = array<i32>} : memref<1x1xf32, #tpu.memory_space<vmem>>, vector<1x1xf32>,
    %c0_20 = arith.constant 0 : index
    %c0_21 = arith.constant 0 : index
    %37 = vector.load %arg8[%c0_20, %c0_21] : memref<1x1xf32, #tpu.memory_space<vmem>>, vector<1x1xf32>
    tpu.vector_store %arg8[%c0_20, %c0_21], %25 {strides = array<i32>} : memref<1x1xf32, #tpu.memory_space<vmem>>, vector<1x1xf32>,
    %38 = arith.index_cast %arg0 : i32 to index
    %c0_22 = arith.constant 0 : index
    %39 = vector.load %arg6[%38, %c0_22] : memref<2x128xf32, #tpu.memory_space<vmem>>, vector<1x128xf32>
    tpu.vector_store %arg6[%38, %c0_22], %30 {strides = array<i32>} : memref<2x128xf32, #tpu.memory_space<vmem>>, vector<1x128xf32>,
    %40 = arith.index_cast %arg0 : i32 to index
    %c0_23 = arith.constant 0 : index
    %41 = vector.load %arg10[%40, %c0_23] : memref<2x1xf32, #tpu.memory_space<vmem>>, vector<1x1xf32>
    tpu.vector_store %arg10[%40, %c0_23], %25 {strides = array<i32>} : memref<2x1xf32, #tpu.memory_space<vmem>>, vector<1x1xf32>,
    %42 = arith.truncf %30 : vector<1x128xf32> to vector<1x128xbf16>
    %cst_24 = arith.constant dense<0.000000e+00> : vector<1x512xf32>
    %43 = tpu.matmul %42, %4, %cst_24 {dimension_numbers = #tpu.dot_dimension_numbers<[1], [0], [0], [1], [0, 0, 1, 1], [], []>} : vector<1x128xbf16>, vector<128x512xbf16>, vector<1x512xf32> -> vector<1x512xf32>
    %c0_25 = arith.constant 0 : index
    %c0_26 = arith.constant 0 : index
    %44 = vector.load %arg5[%c0_25, %c0_26] : memref<1x512xf32, #tpu.memory_space<vmem>>, vector<1x512xf32>
    %45 = vector.broadcast %27 : vector<1x1xf32> to vector<1x512xf32>
    %46 = arith.mulf %45, %44 : vector<1x512xf32>
    %47 = arith.addf %46, %43 : vector<1x512xf32>
    %c0_27 = arith.constant 0 : index
    %c0_28 = arith.constant 0 : index
    %48 = vector.load %arg5[%c0_27, %c0_28] : memref<1x512xf32, #tpu.memory_space<vmem>>, vector<1x512xf32>
    tpu.vector_store %arg5[%c0_27, %c0_28], %47 {strides = array<i32>} : memref<1x512xf32, #tpu.memory_space<vmem>>, vector<1x512xf32>,
    %c1_i32 = arith.constant 1 : i32
    %49 = arith.cmpi eq, %arg0, %c1_i32 : i32
    %50 = arith.extui %49 : i1 to i32
    %c0_i32_29 = arith.constant 0 : i32
    %51 = arith.cmpi ne, %50, %c0_i32_29 : i32
    scf.if %51 {
      %c0_30 = arith.constant 0 : index
      %c0_31 = arith.constant 0 : index
      %52 = vector.load %arg9[%c0_30, %c0_31] : memref<1x1xf32, #tpu.memory_space<vmem>>, vector<1x1xf32>
      %53 = tpu.reciprocal %52 : vector<1x1xf32> -> vector<1x1xf32>
      %c0_32 = arith.constant 0 : index
      %c0_33 = arith.constant 0 : index
      %54 = vector.load %arg5[%c0_32, %c0_33] : memref<1x512xf32, #tpu.memory_space<vmem>>, vector<1x512xf32>
      %55 = vector.broadcast %53 : vector<1x1xf32> to vector<1x512xf32>
      %56 = arith.mulf %54, %55 : vector<1x512xf32>
      %c0_34 = arith.constant 0 : index
      %c0_35 = arith.constant 0 : index
      %57 = vector.load %arg5[%c0_34, %c0_35] : memref<1x512xf32, #tpu.memory_space<vmem>>, vector<1x512xf32>
      tpu.vector_store %arg5[%c0_34, %c0_35], %56 {strides = array<i32>} : memref<1x512xf32, #tpu.memory_space<vmem>>, vector<1x512xf32>,
      %c0_36 = arith.constant 0 : index
      %c0_37 = arith.constant 0 : index
      %58 = vector.load %arg10[%c0_36, %c0_37] : memref<2x1xf32, #tpu.memory_space<vmem>>, vector<2x1xf32>
      %c0_38 = arith.constant 0 : index
      %c0_39 = arith.constant 0 : index
      %59 = vector.load %arg8[%c0_38, %c0_39] : memref<1x1xf32, #tpu.memory_space<vmem>>, vector<1x1xf32>
      %60 = vector.broadcast %59 : vector<1x1xf32> to vector<2x1xf32>
      %61 = arith.subf %58, %60 : vector<2x1xf32>
      %62 = math.exp %61 : vector<2x1xf32>
      %63 = vector.broadcast %53 : vector<1x1xf32> to vector<2x1xf32>
      %64 = arith.mulf %62, %63 : vector<2x1xf32>
      %c0_40 = arith.constant 0 : index
      %c0_41 = arith.constant 0 : index
      %65 = vector.load %arg6[%c0_40, %c0_41] : memref<2x128xf32, #tpu.memory_space<vmem>>, vector<2x128xf32>
      %66 = vector.broadcast %64 : vector<2x1xf32> to vector<2x128xf32>
      %67 = arith.mulf %65, %66 : vector<2x128xf32>
      %c0_42 = arith.constant 0 : index
      %c0_43 = arith.constant 0 : index
      %68 = vector.load %arg6[%c0_42, %c0_43] : memref<2x128xf32, #tpu.memory_space<vmem>>, vector<2x128xf32>
      tpu.vector_store %arg6[%c0_42, %c0_43], %67 {strides = array<i32>} : memref<2x128xf32, #tpu.memory_space<vmem>>, vector<2x128xf32>,
    } else {
    }
    return
  }
  func.func @transform_0(%arg0: i32) -> (i32, i32) {
    %c0_i32 = arith.constant 0 : i32
    %c0_i32_0 = arith.constant 0 : i32
    return %arg0, %c0_i32 : i32, i32
  }
  func.func @transform_1(%arg0: i32) -> (i32, i32) {
    %c0_i32 = arith.constant 0 : i32
    %c0_i32_0 = arith.constant 0 : i32
    %c0_i32_1 = arith.constant 0 : i32
    return %c0_i32, %c0_i32_0 : i32, i32
  }
  func.func @transform_2(%arg0: i32) -> (i32, i32) {
    %c0_i32 = arith.constant 0 : i32
    %c0_i32_0 = arith.constant 0 : i32
    %c0_i32_1 = arith.constant 0 : i32
    return %c0_i32, %c0_i32_0 : i32, i32
  }
  func.func @transform_3(%arg0: i32) -> (i32, i32) {
    %c0_i32 = arith.constant 0 : i32
    %c0_i32_0 = arith.constant 0 : i32
    %c0_i32_1 = arith.constant 0 : i32
    return %c0_i32, %c0_i32_0 : i32, i32
  }
  func.func @transform_4(%arg0: i32) -> (i32, i32) {
    %c0_i32 = arith.constant 0 : i32
    %c0_i32_0 = arith.constant 0 : i32
    %c0_i32_1 = arith.constant 0 : i32
    return %c0_i32, %c0_i32_0 : i32, i32
  }
  func.func @transform_5(%arg0: i32) -> (i32, i32) {
    %c0_i32 = arith.constant 0 : i32
    %c0_i32_0 = arith.constant 0 : i32
    %c0_i32_1 = arith.constant 0 : i32
    return %c0_i32, %c0_i32_0 : i32, i32
  }
  func.func @transform_6(%arg0: i32) -> (i32, i32) {
    %c0_i32 = arith.constant 0 : i32
    %c0_i32_0 = arith.constant 0 : i32
    return %arg0, %c0_i32 : i32, i32
  }
}

</mosaic_0001>

<bundles_post_ra>
// kernel: tpu_custom_call.1
= control target key start
LH: loop header
LB: loop body
LE: loop exit
PB: predicated region body
PF: predicated region fallthrough
CT: control target
= control target key end

     0   :  { %12 = vsyncpa [#allocation6], 0  ;;  %s2426_s0 = inlined_call_operand.hbm [shape: f32[256,512], index: 0, kind: input, shape index: {}]   ;;  %s2427_s1 = inlined_call_operand.hbm [shape: bf16[512,128], index: 1, kind: input, shape index: {}]   ;;  %s2428_s2 = inlined_call_operand.vmem [shape: f32[1,128], index: 2, kind: input, shape index: {}]   ;;  %s2429_s3 = inlined_call_operand.vmem [shape: f32[1,128], index: 3, kind: input, shape index: {}]   ;;  %s2430_s4 = inlined_call_operand.hbm [shape: f32[1,512], index: 4, kind: output, shape index: {0}]   ;;  %s2431_s5 = inlined_call_operand.hbm [shape: f32[2,128], index: 5, kind: output, shape index: {1}]   ;;  %s2432_s6 = inlined_call_operand.hbm [shape: f32[256,128], index: 6, kind: output, shape index: {2}]  }
   0x1   :  { %14 = vsyncpa [#allocation6 + $0x1], 0 }
   0x2   :  { %15 = vsyncpa [#allocation9], 0 }
   0x3   :  { %16 = vsyncpa [#allocation7], 0 }
   0x4   :  { %17 = vsyncpa [#allocation12], 0  ;;  %s1947_s21 = smov 0   ;;  %s1949_s22 = smov 0  }
   0x5   :  { %s1951_s23 = smov 0   ;;  %s1953_s24 = smov 0  }
   0x6 LB: > { %s1966_s25 = sadd.s32 4294967295, %s1892_s24   ;;  %s1306_s26 = sadd.s32 4294967294, %s1892_s24   ;;  %s1892_s24 = sphi %s1953_s24, %s2465_s24   ;;  %s1888_s23 = sphi %s1951_s23, %s2464_s23   ;;  %s1884_s22 = sphi %s1949_s22, %s2463_s22   ;;  %s1880_s21 = sphi %s1947_s21, %s2462_s21  }
   0x7   : > { %p43_p0 = scmp.ne.s32.totalorder %s1884_s22, %s1880_s21  ;;  %p2433_p1 = scmp.eq.s32.totalorder %s1966_s25, 0 }
   0x8   : > { %p178_p3 = scmp.eq.s32.totalorder %s1306_s26, 1  ;;  %p1307_p5 = scmp.ge.s32.totalorder %s1892_s24, 1 }
   0x9   : > { %p1976_p4 = por %p2433_p1, %p43_p0  ;;  %p185_p7 = scmp.lt.s32.totalorder %s1892_s24, 3 }
   0xa   : > { %p1981_p6 = por %p178_p3, %p43_p0  ;;  %s1894_s30 = smov [#allocation8]  }
   0xb   : > { %s2437_s27 = scalar_select %p1976_p4, 1, 0 }
   0xc   : > { %s2438_s28 = scalar_select %p1981_p6, 1, 0 }
   0xd   : > { %p1987_p9 = pnand %p1307_p5, %p185_p7  ;;  %s197_s7 = sshll.u32 %s1894_s30, 4  ;;  %s198_s7 = int_to_ptr.vmem [resolvable:$true] %s197_s7 }
   0xe   : > { %s2001_s9 = sadd.s32 1, %s1892_s24   ;;  %s30_s10 = sadd.s32 1, %s1888_s23 }
   0xf   : > { %s2439_s29 = scalar_select %p1987_p9, 1, 0 }
  0x10   : > { %p1571_p10 = pneg %p1987_p9  ;;  %s27_s11 = ssub.s32 %s1892_s24, %s2001_s9 }
  0x11   : > { %s1725_s12 = scalar_lea.vmem %s198_s7, 4096  ;;  %p1733_p7 = scmp.lt.s32.totalorder %s198_s7, %s198_s7 }
  0x12   : > { %p1996_p12 = pnand %p1571_p10, %p2433_p1  ;;  %p1726_p0 = scmp.ne.s32.totalorder %s198_s7, %s1725_s12 }
  0x13   : > { %p1734_p8 = scmp.lt.s32.totalorder %s1725_s12, %s1725_s12 }
  0x14   : > { %p1716_p13 = pneg %p1996_p12 }
  0x15   : > { %p1735_p11 = por %p1734_p8, %p1733_p7 }
  0x16   : > { %p1728_p3 = pnand %p1726_p0, %p1716_p13 }
  0x18   : > { %p1729_p5 = pneg %p1728_p3 }
  0x1a   : > { %p1736_p2 = pnand %p1735_p11, %p1729_p5 }
  0x1c   : > { %1739 = shalt.err (!%p1736_p2)
}
  0x1d   : > { %s1895_s13 = smov 64   ;;  %s1896_s14 = smov 4  }
  0x1e   : > { %1574 = dma.hbm_to_vmem [thread:$0]  (!%p1996_p12), %s2427_s1, 4096, %s198_s7, [#allocation9], %s1895_s13, %s1895_s13, %s1896_s14  }
  0x1f   : > { %p28_p10 = scmp.eq.s32.totalorder %s27_s11, 0  ;;  %p37_p8 = scmp.ne.s32.totalorder %s1888_s23, %s1884_s22 }
  0x20   : > { %p38_p11 = scmp.eq.s32.totalorder %s1892_s24, 0  ;;  %p1584_p2 = scmp.lt.s32.totalorder %s1892_s24, 2 }
  0x21   : > { %s2018_s17 = scalar_select %p28_p10, %s1888_s23, %s30_s10  }
  0x22   : > { %p39_p13 = por %p38_p11, %p37_p8  ;;  %p2441_p0 = scmp.eq.s32.totalorder %s1966_s25, 1 }
  0x23   : > { %s217_s19 = sand.u32 1, %s1888_s23   ;;  %s1367_s20 = sshll.u32 %s1892_s24, 13 }
  0x24   : > { %p2022_p3 = por %p2441_p0, %p37_p8  ;;  %s1310_s21 = sshll.u32 %s217_s19, 9 }
  0x25   : > { %s2031_s12 = scalar_lea.hbm %s2426_s0, %s1367_s20  ;;  %s221_s7 = scalar_lea.vmem [#allocation5], %s1310_s21 }
  0x26   : > { %s2442_s18 = scalar_select %p2022_p3, 1, 0 }
  0x27   : > { %s229_s10 = sshll.u32 %s221_s7, 4  ;;  %p2033_p12 = pnand %p1584_p2, %p39_p13  ;;  %s2037_s10 = int_to_ptr.vmem [resolvable:$true] %s229_s10 }
  0x28   : > { %s2039_s13 = scalar_lea.sflag [#allocation6], %s217_s19  ;;  %s1740_s14 = scalar_lea.hbm %s2031_s12, 8192 }
  0x29   : > { %p1741_p5 = scmp.ne.s32.totalorder %s2031_s12, %s1740_s14  ;;  %p1742_p7 = pneg %p2033_p12 }
  0x2a   : > { %s1745_s20 = scalar_lea.hbm %s2426_s0, 16384  ;;  %p1746_p11 = scmp.lt.s32.totalorder %s2031_s12, %s2426_s0 }
  0x2b   : > { %p1743_p10 = pnand %p1742_p7, %p1741_p5  ;;  %p1747_p2 = scmp.lt.s32.totalorder %s1745_s20, %s1740_s14 }
  0x2d   : > { %p1744_p8 = pneg %p1743_p10  ;;  %p1748_p13 = por %p1747_p2, %p1746_p11 }
  0x2f   : > { %p1749_p0 = pnand %p1748_p13, %p1744_p8 }
  0x31   : > { %1752 = shalt.err (!%p1749_p0)
}
  0x32   : > { %s1753_s19 = scalar_lea.vmem %s2037_s10, 8192  ;;  %s1897_s8 = smov [#allocation5]  }
  0x33   : > { %p1754_p1 = scmp.ne.s32.totalorder %s2037_s10, %s1753_s19  ;;  %s1758_s7 = sshll.u32 %s1897_s8, 4  ;;  %s1759_s7 = int_to_ptr.vmem [resolvable:$false] %s1758_s7 }
  0x34   : > { %s1760_s15 = scalar_lea.vmem %s1759_s7, 16384  ;;  %p1761_p10 = scmp.lt.s32.totalorder %s2037_s10, %s1759_s7 }
  0x35   : > { %p1756_p6 = pnand %p1754_p1, %p1742_p7  ;;  %p1762_p3 = scmp.lt.s32.totalorder %s1760_s15, %s1753_s19 }
  0x37   : > { %p1757_p5 = pneg %p1756_p6  ;;  %p1763_p4 = por %p1762_p3, %p1761_p10 }
  0x39   : > { %p1764_p9 = pnand %p1763_p4, %p1757_p5 }
  0x3b   : > { %1767 = shalt.err (!%p1764_p9)
}
  0x3c   : > { %s1898_s14 = smov 512   ;;  %s1899_s16 = smov 32  }
  0x3d   : > { %1578 = dma.hbm_to_vmem [thread:$0]  (!%p2033_p12), %s2031_s12, 8192, %s2037_s10, %s2039_s13, %s1898_s14, %s1898_s14, %s1899_s16  }
  0x3e   : > { %p2444_p1 = scmp.ne.s32.totalorder %s2439_s29, 0 }
  0x3f   : > { %s243_s20 = sand.u32 (!%p2444_p1), 1, %s1884_s22   ;;  %p2445_p4 = scmp.ne.s32.totalorder (!%p2444_p1), %s2437_s27, 0 }
  0x40   : > { %241 = sbr.rel (%p2444_p1) target bundleno = 1351 (0x547), region = 36  ;;  %s1315_s21 = sshll.u32 (!%p2444_p1), %s243_s20, 9 }
  0x41   : > { %s244_s30 = scalar_lea.sflag (!%p2444_p1), [#allocation6], %s243_s20  ;;  %s2063_s19 = scalar_lea.vmem (!%p2444_p1), [#allocation5], %s1315_s21 }
  0x45   : > { %1859 = dma.done.wait (%p2445_p4), %s244_s30, 8192  }
  0x46   : > { %1861 = vsyncadd (%p2445_p4), %s244_s30, 4294959104  ;;  %p2446_p6 = scmp.eq.s32.totalorder %s1966_s25, 0 }
  0x48   : > { %1863 = dma.done.wait (%p2446_p6), [#allocation9], 4096   ;;  %p2447_p9 = pmov %p2446_p6 }
  0x49   : > { %s1317_s29 = sshll.u32 %s243_s20, 7  ;;  %p2448_p3 = scmp.ne.s32.totalorder %s1966_s25, 0 }
  0x4a   : > { %1865 = vsyncadd (%p2447_p9), [#allocation9], 4294963200  ;;  %s2073_s12 = scalar_lea.vmem [#allocation13], %s1317_s29 }
  0x4b   : > { %286 = sbr.rel (%p2448_p3) target bundleno = 84 (0x54), region = 48 }
  0x50   : > { %v287_v0 = vlaneseq  ;;  %vm292_vm0 = vcmask 0   ;;  %v1900_v1 = vmov -1e+30   ;;  %v1901_v2 = vmov 0.0  }
  0x51   : > { %293 = vst.msk [vmem:[#allocation2] sm:$0x1] %vm292_vm0, %v1900_v1  ;;  %294 = vst.msk [vmem:[#allocation3] sm:$0x1] %vm292_vm0, %v1901_v2 }
  0x52   : > { %vm289_vm1 = vcmp.lt.s32.totalorder %v287_v0, 512 }
  0x53   : > { %291 = vst.msk [vmem:[#allocation10] sm:$0xf] %vm289_vm1, %v1901_v2 }
  0x54 PF: > { %v1641_v3 = vld [vmem:[#allocation8 + $0x78] sm:$0xff]   ;;  %v1645_v7 = vld [vmem:[#allocation8 + $0x70] sm:$0xff]   ;;  %v1649_v11 = vld [vmem:[#allocation8 + $0x68] sm:$0xff]   ;;  %vm1903_vm2 = vmmov 0   ;;  %s1352_s8 = sshll.u32 %s1966_s25, 7  ;;  %vm959_vm4 = vcmask 1040384  }
  0x55   : > { %v1642_v4 = vld [vmem:[#allocation8 + $0xf8] sm:$0xff]   ;;  %1375 = vmatprep.subr.bf16.mxu0 %v1641_v3  ;;  %v1646_v8 = vld [vmem:[#allocation8 + $0xf0] sm:$0xff]   ;;  %v1650_v12 = vld [vmem:[#allocation8 + $0xe8] sm:$0xff]   ;;  %vm985_vm5 = vcmask 0   ;;  %s1371_s7 = scalar_lea.vmem [#allocation4], %s1892_s24  ;;  %s1368_s15 = scalar_lea.vmem [#allocation11], %s1892_s24 }
  0x56   : > { %v1643_v5 = vld [vmem:[#allocation8 + $0x38] sm:$0xff]   ;;  %1439 = vmatprep.subr.bf16.mxu1 %v1642_v4  ;;  %v1647_v9 = vld [vmem:[#allocation8 + $0x30] sm:$0xff]   ;;  %v1651_v13 = vld [vmem:[#allocation8 + $0x28] sm:$0xff]   ;;  %p1355_p12 = scmp.ne.s32.totalorder %s1966_s25, 1 }
  0x57   : > { %v1644_v6 = vld [vmem:[#allocation8 + $0xb8] sm:$0xff]   ;;  %1376 = vmatpush3.bf16.msra.mxu0 %v1643_v5  ;;  %v1648_v10 = vld [vmem:[#allocation8 + $0xb0] sm:$0xff]   ;;  %v1652_v14 = vld [vmem:[#allocation8 + $0xa8] sm:$0xff]  }
  0x58   : > { %1440 = vmatpush3.bf16.msra.mxu1 %v1644_v6  ;;  %1377 = vmatprep.subr.bf16.mxu0 %v1645_v7  ;;  %v1653_v15 = vld [vmem:[#allocation8 + $0x60] sm:$0xff]   ;;  %v1657_v19 = vld [vmem:[#allocation8 + $0x58] sm:$0xff]   ;;  %v1661_v23 = vld [vmem:[#allocation8 + $0x50] sm:$0xff]  }
  0x59   : > { %1441 = vmatprep.subr.bf16.mxu1 %v1646_v8  ;;  %v1654_v16 = vld [vmem:[#allocation8 + $0xe0] sm:$0xff]   ;;  %v1658_v20 = vld [vmem:[#allocation8 + $0xd8] sm:$0xff]   ;;  %v1662_v24 = vld [vmem:[#allocation8 + $0xd0] sm:$0xff]  }
  0x5a   : > { %v1655_v17 = vld [vmem:[#allocation8 + $0x20] sm:$0xff]   ;;  %v1659_v21 = vld [vmem:[#allocation8 + $0x18] sm:$0xff]   ;;  %v1663_v25 = vld [vmem:[#allocation8 + $0x10] sm:$0xff]  }
  0x5b   : > { %1378 = vmatpush3.bf16.msra.mxu0 %v1647_v9  ;;  %v1656_v18 = vld [vmem:[#allocation8 + $0xa0] sm:$0xff]   ;;  %v1660_v22 = vld [vmem:[#allocation8 + $0x98] sm:$0xff]   ;;  %v1664_v26 = vld [vmem:[#allocation8 + $0x90] sm:$0xff]  }
  0x5c   : > { %1442 = vmatpush3.bf16.msra.mxu1 %v1648_v10  ;;  %1379 = vmatprep.subr.bf16.mxu0 %v1649_v11  ;;  %v1665_v27 = vld [vmem:[#allocation8 + $0x48] sm:$0xff]   ;;  %v1669_v31 = vld [vmem:[#allocation8 + $0x40] sm:$0xff]   ;;  %v298_v37 = vld [vmem:[%s2063_s19 + $0x18] sm:$0xff] }
  0x5d   : > { %1443 = vmatprep.subr.bf16.mxu1 %v1650_v12  ;;  %v1666_v28 = vld [vmem:[#allocation8 + $0xc8] sm:$0xff]   ;;  %v1670_v32 = vld [vmem:[#allocation8 + $0xc0] sm:$0xff]   ;;  %v302_v39 = vld [vmem:[%s2063_s19 + $0x38] sm:$0xff] }
  0x5e   : > { %v1667_v29 = vld [vmem:[#allocation8 + $0x8] sm:$0xff]   ;;  %v1671_v33 = vld [vmem:[#allocation8] sm:$0xff]   ;;  %v2085_v42 = vpack.c.bf16 %v302_v39, %v298_v37  ;;  %v297_v44 = vld [vmem:[%s2063_s19 + $0x10] sm:$0xff] }
  0x5f   : > { %1380 = vmatpush3.bf16.msra.mxu0 %v1651_v13  ;;  %v1668_v30 = vld [vmem:[#allocation8 + $0x88] sm:$0xff]   ;;  %v1672_v34 = vld [vmem:[#allocation8 + $0x80] sm:$0xff]   ;;  %v301_v45 = vld [vmem:[%s2063_s19 + $0x30] sm:$0xff] }
  0x60   : > { %1444 = vmatpush3.bf16.msra.mxu1 %v1652_v14  ;;  %1381 = vmatprep.subr.bf16.mxu0 %v1653_v15  ;;  %v296_v35 = vld [vmem:[%s2063_s19 + $0x8] sm:$0xff]  ;;  %v295_v40 = vld [vmem:[%s2063_s19] sm:$0xff]  ;;  %v2093_v47 = vpack.c.bf16 %v301_v45, %v297_v44  ;;  %v306_v49 = vld [vmem:[%s2063_s19 + $0x58] sm:$0xff] }
  0x61   : > { %1445 = vmatprep.subr.bf16.mxu1 %v1654_v16  ;;  %v300_v36 = vld [vmem:[%s2063_s19 + $0x28] sm:$0xff]  ;;  %v299_v41 = vld [vmem:[%s2063_s19 + $0x20] sm:$0xff]  ;;  %v310_v50 = vld [vmem:[%s2063_s19 + $0x78] sm:$0xff]  ;;  %783 = vmatprep.mubr.bf16.mxu1 %v2085_v42 }
  0x62   : > { %v2080_v38 = vpack.c.bf16 %v300_v36, %v296_v35  ;;  %v2087_v43 = vpack.c.bf16 %v299_v41, %v295_v40  ;;  %v304_v46 = vld [vmem:[%s2063_s19 + $0x48] sm:$0xff]  ;;  %v2102_v52 = vpack.c.bf16 %v310_v50, %v306_v49  ;;  %v303_v53 = vld [vmem:[%s2063_s19 + $0x40] sm:$0xff]  ;;  %v305_v55 = vld [vmem:[%s2063_s19 + $0x50] sm:$0xff] }
  0x63   : > { %1382 = vmatpush3.bf16.msra.mxu0 %v1655_v17  ;;  %v308_v48 = vld [vmem:[%s2063_s19 + $0x68] sm:$0xff]  ;;  %v307_v54 = vld [vmem:[%s2063_s19 + $0x60] sm:$0xff]  ;;  %v309_v56 = vld [vmem:[%s2063_s19 + $0x70] sm:$0xff] }
  0x64   : > { %1446 = vmatpush3.bf16.msra.mxu1 %v1656_v18  ;;  %1383 = vmatprep.subr.bf16.mxu0 %v1657_v19  ;;  %v2100_v51 = vpack.c.bf16 %v308_v48, %v304_v46  ;;  %v312_v57 = vld [vmem:[%s2063_s19 + $0x88] sm:$0xff]  ;;  %v314_v59 = vld [vmem:[%s2063_s19 + $0x98] sm:$0xff]  ;;  %v2115_v61 = vpack.c.bf16 %v307_v54, %v303_v53  ;;  %v2117_v62 = vpack.c.bf16 %v309_v56, %v305_v55  ;;  %v311_v1 = vld [vmem:[%s2063_s19 + $0x80] sm:$0xff] }
  0x65   : > { %1447 = vmatprep.subr.bf16.mxu1 %v1658_v20  ;;  %686 = vmatprep.mubr.bf16.mxu0 %v2080_v38  ;;  %v316_v58 = vld [vmem:[%s2063_s19 + $0xa8] sm:$0xff]  ;;  %v318_v60 = vld [vmem:[%s2063_s19 + $0xb8] sm:$0xff]  ;;  %v315_v2 = vld [vmem:[%s2063_s19 + $0xa0] sm:$0xff] }
  0x66   : > { %v2119_v63 = vpack.c.bf16 %v316_v58, %v312_v57  ;;  %v2121_v0 = vpack.c.bf16 %v318_v60, %v314_v59  ;;  %v313_v3 = vld [vmem:[%s2063_s19 + $0x90] sm:$0xff]  ;;  %v320_v5 = vld [vmem:[%s2063_s19 + $0xc8] sm:$0xff]  ;;  %v322_v7 = vld [vmem:[%s2063_s19 + $0xd8] sm:$0xff]  ;;  %v2135_v9 = vpack.c.bf16 %v315_v2, %v311_v1 }
  0x67   : > { %1384 = vmatpush3.bf16.msra.mxu0 %v1659_v21  ;;  %v317_v4 = vld [vmem:[%s2063_s19 + $0xb0] sm:$0xff]  ;;  %v324_v6 = vld [vmem:[%s2063_s19 + $0xe8] sm:$0xff]  ;;  %v326_v8 = vld [vmem:[%s2063_s19 + $0xf8] sm:$0xff] }
  0x68   : > { %1448 = vmatpush3.bf16.msra.mxu1 %v1660_v22  ;;  %1385 = vmatprep.subr.bf16.mxu0 %v1661_v23  ;;  %v2137_v10 = vpack.c.bf16 %v317_v4, %v313_v3  ;;  %v372_v11 = vpack.c.bf16 %v324_v6, %v320_v5  ;;  %v2139_v12 = vpack.c.bf16 %v326_v8, %v322_v7  ;;  %v352_v13 = vld [vmem:[%s2063_s19 + $0x1c8] sm:$0xff]  ;;  %v319_v14 = vld [vmem:[%s2063_s19 + $0xc0] sm:$0xff]  ;;  %v321_v19 = vld [vmem:[%s2063_s19 + $0xd0] sm:$0xff] }
  0x69   : > { %1449 = vmatprep.subr.bf16.mxu1 %v1662_v24  ;;  %v323_v15 = vld [vmem:[%s2063_s19 + $0xe0] sm:$0xff]  ;;  %v344_v16 = vld [vmem:[%s2063_s19 + $0x188] sm:$0xff]  ;;  %v325_v23 = vld [vmem:[%s2063_s19 + $0xf0] sm:$0xff] }
  0x6a   : > { %v348_v17 = vld [vmem:[%s2063_s19 + $0x1a8] sm:$0xff]  ;;  %v351_v21 = vld [vmem:[%s2063_s19 + $0x1c0] sm:$0xff]  ;;  %v2168_v35 = vpack.c.bf16 %v325_v23, %v321_v19  ;;  %v329_v49 = vld [vmem:[%s2063_s19 + $0x110] sm:$0xff] }
  0x6b   : > { %1386 = vmatpush3.bf16.msra.mxu0 %v1663_v25  ;;  %v356_v18 = vld [vmem:[%s2063_s19 + $0x1e8] sm:$0xff]  ;;  %v355_v22 = vld [vmem:[%s2063_s19 + $0x1e0] sm:$0xff]  ;;  %v333_v50 = vld [vmem:[%s2063_s19 + $0x130] sm:$0xff] }
  0x6c   : > { %1450 = vmatpush3.bf16.msra.mxu1 %v1664_v26  ;;  %1387 = vmatprep.subr.bf16.mxu0 %v1665_v27  ;;  %v2149_v20 = vpack.c.bf16 %v356_v18, %v352_v13  ;;  %v328_v24 = vld [vmem:[%s2063_s19 + $0x108] sm:$0xff]  ;;  %v2157_v26 = vpack.c.bf16 %v355_v22, %v351_v21  ;;  %v330_v27 = vld [vmem:[%s2063_s19 + $0x118] sm:$0xff]  ;;  %v335_v41 = vld [vmem:[%s2063_s19 + $0x140] sm:$0xff]  ;;  %v2182_v56 = vpack.c.bf16 %v333_v50, %v329_v49 }
  0x6d   : > { %1451 = vmatprep.subr.bf16.mxu1 %v1666_v28  ;;  %v332_v25 = vld [vmem:[%s2063_s19 + $0x128] sm:$0xff]  ;;  %v384_v28 = vpack.c.bf16 %v348_v17, %v344_v16  ;;  %v339_v44 = vld [vmem:[%s2063_s19 + $0x160] sm:$0xff]  ;;  %v338_v53 = vld [vmem:[%s2063_s19 + $0x158] sm:$0xff] }
  0x6e   : > { %v376_v36 = vpack.c.bf16 %v332_v25, %v328_v24  ;;  %v327_v45 = vld [vmem:[%s2063_s19 + $0x100] sm:$0xff]  ;;  %v379_v48 = vpack.c.bf16 %v339_v44, %v335_v41  ;;  %v342_v54 = vld [vmem:[%s2063_s19 + $0x178] sm:$0xff]  ;;  %v337_v58 = vld [vmem:[%s2063_s19 + $0x150] sm:$0xff] }
  0x6f   : > { %1388 = vmatpush3.bf16.msra.mxu0 %v1667_v29  ;;  %v343_v29 = vld [vmem:[%s2063_s19 + $0x180] sm:$0xff]  ;;  %v2184_v57 = vpack.c.bf16 %v342_v54, %v338_v53  ;;  %v341_v59 = vld [vmem:[%s2063_s19 + $0x170] sm:$0xff]  ;;  %v346_v60 = vld [vmem:[%s2063_s19 + $0x198] sm:$0xff] }
  0x70   : > { %1452 = vmatpush3.bf16.msra.mxu1 %v1668_v30  ;;  %1389 = vmatprep.subr.bf16.mxu0 %v1669_v31  ;;  %v347_v30 = vld [vmem:[%s2063_s19 + $0x1a0] sm:$0xff]  ;;  %v334_v31 = vld [vmem:[%s2063_s19 + $0x138] sm:$0xff]  ;;  %v2193_v2 = vpack.c.bf16 %v341_v59, %v337_v58  ;;  %v345_v4 = vld [vmem:[%s2063_s19 + $0x190] sm:$0xff] }
  0x71   : > { %1453 = vmatprep.subr.bf16.mxu1 %v1670_v32  ;;  %v336_v32 = vld [vmem:[%s2063_s19 + $0x148] sm:$0xff]  ;;  %v383_v37 = vpack.c.bf16 %v347_v30, %v343_v29  ;;  %v2170_v39 = vpack.c.bf16 %v334_v31, %v330_v27  ;;  %v331_v46 = vld [vmem:[%s2063_s19 + $0x120] sm:$0xff]  ;;  %v350_v1 = vld [vmem:[%s2063_s19 + $0x1b8] sm:$0xff] }
  0x72   : > { %v375_v55 = vpack.c.bf16 %v331_v46, %v327_v45  ;;  %v2195_v3 = vpack.c.bf16 %v350_v1, %v346_v60  ;;  %v349_v5 = vld [vmem:[%s2063_s19 + $0x1b0] sm:$0xff]  ;;  %v354_v6 = vld [vmem:[%s2063_s19 + $0x1d8] sm:$0xff] }
  0x73   : > { %1390 = vmatpush3.bf16.msra.mxu0 %v1671_v33  ;;  %v340_v33 = vld [vmem:[%s2063_s19 + $0x168] sm:$0xff]  ;;  %v2207_v7 = vpack.c.bf16 %v349_v5, %v345_v4  ;;  %v2225_v13 = vld [vmem:[%s2428_s2] ss:$0 sm:$0xff] }
  0x74   : > { %1454 = vmatpush3.bf16.msra.mxu1 %v1672_v34  ;;  %v371_v34 = vpack.c.bf16 %v323_v15, %v319_v14  ;;  %v380_v40 = vpack.c.bf16 %v340_v33, %v336_v32 }
  0x75   : > { %993 = vmatprep.subr.bf16.mxu1 %v2149_v20 }
  0x76   : > { %687 = vmatmul.mubr.bf16.vlgmr.msra.gmra.mxu0 %v2087_v43 }
  0x77   : > { %784 = vmatmul.mubr.bf16.vlgmr.msra.gmra.mxu1 %v2093_v47  ;;  %694 = vmatprep.mubr.bf16.mxu0 %v2100_v51 }
  0x78   : > { %791 = vmatprep.mubr.bf16.mxu1 %v2102_v52  ;;  %994 = vmatpush1.bf16.msra.mxu1 %v2157_v26 }
  0x79   : > { %995 = vmatprep.subr.bf16.mxu1 %v384_v28 }
  0x7c   : > { %996 = vmatpush1.bf16.msra.mxu1 %v383_v37 }
  0x7d   : > { %997 = vmatprep.subr.bf16.mxu1 %v380_v40 }
  0x7e   : > { %695 = vmatmul.mubr.bf16.gmra.mxu0 %v2115_v61 }
  0x7f   : > { %792 = vmatmul.mubr.bf16.gmra.mxu1 %v2117_v62  ;;  %702 = vmatprep.mubr.bf16.mxu0 %v2119_v63 }
  0x80   : > { %799 = vmatprep.mubr.bf16.mxu1 %v2121_v0  ;;  %998 = vmatpush1.bf16.msra.mxu1 %v379_v48 }
  0x81   : > { %999 = vmatprep.subr.bf16.mxu1 %v376_v36 }
  0x84   : > { %1000 = vmatpush1.bf16.msra.mxu1 %v375_v55 }
  0x85   : > { %1001 = vmatprep.subr.bf16.mxu1 %v372_v11 }
  0x86   : > { %703 = vmatmul.mubr.bf16.gmra.mxu0 %v2135_v9 }
  0x87   : > { %800 = vmatmul.mubr.bf16.gmra.mxu1 %v2137_v10  ;;  %710 = vmatprep.mubr.bf16.mxu0 %v372_v11 }
  0x88   : > { %807 = vmatprep.mubr.bf16.mxu1 %v2139_v12  ;;  %1002 = vmatpush1.bf16.msra.mxu1 %v371_v34 }
  0x89   : > { %1003 = vmatprep.subr.bf16.mxu1 %v2119_v63  ;;  %v358_v63 = vld [vmem:[%s2063_s19 + $0x1f8] sm:$0xff] }
  0x8a   : > { %v2209_v8 = vpack.c.bf16 %v358_v63, %v354_v6 }
  0x8c   : > { %1004 = vmatpush1.bf16.msra.mxu1 %v2135_v9  ;;  %v357_v9 = vld [vmem:[%s2063_s19 + $0x1f0] sm:$0xff] }
  0x8d   : > { %1005 = vmatprep.subr.bf16.mxu1 %v2100_v51  ;;  %v353_v51 = vld [vmem:[%s2063_s19 + $0x1d0] sm:$0xff] }
  0x8e   : > { %711 = vmatmul.mubr.bf16.gmra.mxu0 %v371_v34  ;;  %v2217_v11 = vpack.c.bf16 %v357_v9, %v353_v51 }
  0x8f   : > { %808 = vmatmul.mubr.bf16.gmra.mxu1 %v2168_v35  ;;  %718 = vmatprep.mubr.bf16.mxu0 %v376_v36 }
  0x90   : > { %815 = vmatprep.mubr.bf16.mxu1 %v2170_v39  ;;  %1006 = vmatpush1.bf16.msra.mxu1 %v2115_v61 }
  0x91   : > { %1007 = vmatprep.subr.bf16.mxu1 %v2080_v38  ;;  %v1902_v38 = vmov 0.0  }
  0x92   : > { %1520 = vmatprep.subr.mxu0 %v1902_v38 }
  0x94   : > { %1008 = vmatpush1.bf16.msra.mxu1 %v2087_v43 }
  0x96   : > { %719 = vmatmul.mubr.bf16.gmra.mxu0 %v375_v55 }
  0x97   : > { %816 = vmatmul.mubr.bf16.gmra.mxu1 %v2182_v56  ;;  %726 = vmatprep.mubr.bf16.mxu0 %v380_v40 }
  0x98   : > { %823 = vmatprep.mubr.bf16.mxu1 %v2184_v57 }
  0x9e   : > { %727 = vmatmul.mubr.bf16.gmra.mxu0 %v379_v48 }
  0x9f   : > { %824 = vmatmul.mubr.bf16.gmra.mxu1 %v2193_v2  ;;  %734 = vmatprep.mubr.bf16.mxu0 %v384_v28 }
  0xa0   : > { %831 = vmatprep.mubr.bf16.mxu1 %v2195_v3 }
  0xa6   : > { %735 = vmatmul.mubr.bf16.gmra.mxu0 %v383_v37 }
  0xa7   : > { %832 = vmatmul.mubr.bf16.gmra.mxu1 %v2207_v7  ;;  %742 = vmatprep.mubr.bf16.mxu0 %v2149_v20 }
  0xa8   : > { %839 = vmatprep.mubr.bf16.mxu1 %v2209_v8 }
  0xae   : > { %743 = vmatmul.mubr.bf16.gmra.mxu0 %v2157_v26 }
  0xaf   : > { %840 = vmatmul.mubr.bf16.gmra.mxu1 %v2217_v11  ;;  %1552 = vmatprep.mubr.msk.f32.mxu0 %vm1903_vm2, %v1902_v38 }
 0x136   : > { %v1391_v61 = vpop.f32.mrf.mxu0 }
 0x137   : > { %v1455_v43 = vpop.f32.mrf.mxu1 }
 0x138   : > { %v1392_v14 = vpop.f32.mrf.mxu0 }
 0x139   : > { %v1393_v15 = vadd.f32 %v1392_v14, %v1391_v61  ;;  %v1456_v16 = vpop.f32.mrf.mxu1 }
 0x13a   : > { %v1394_v17 = vpop.f32.mrf.mxu0  ;;  %v1457_v19 = vadd.f32 %v1456_v16, %v1455_v43 }
 0x13b   : > { %v689_v18 = vadd.f32 %v1393_v15, %v2225_v13  ;;  %v1458_v20 = vpop.f32.mrf.mxu1 }
 0x13c   : > { %v1395_v21 = vpop.f32.mrf.mxu0 }
 0x13d   : > { %v786_v22 = vadd.f32 %v1457_v19, %v689_v18  ;;  %v1396_v23 = vadd.f32 %v1395_v21, %v1394_v17  ;;  %v1459_v24 = vpop.f32.mrf.mxu1 }
 0x13e   : > { %v1397_v25 = vpop.f32.mrf.mxu0  ;;  %v1460_v27 = vadd.f32 %v1459_v24, %v1458_v20 }
 0x13f   : > { %1673 = vtanh.f32 %v786_v22  ;;  %v692_v26 = vadd.f32 %v1396_v23, %v2225_v13  ;;  %v1461_v28 = vpop.f32.mrf.mxu1 }
 0x140   : > { %v1398_v29 = vpop.f32.mrf.mxu0 }
 0x141   : > { %v789_v30 = vadd.f32 %v1460_v27, %v692_v26  ;;  %v1399_v31 = vadd.f32 %v1398_v29, %v1397_v25  ;;  %v1462_v32 = vpop.f32.mrf.mxu1 }
 0x142   : > { %v1400_v33 = vpop.f32.mrf.mxu0  ;;  %v1463_v36 = vadd.f32 %v1462_v32, %v1461_v28 }
 0x143   : > { %1675 = vtanh.f32 %v789_v30  ;;  %v697_v34 = vadd.f32 %v1399_v31, %v2225_v13  ;;  %v1464_v37 = vpop.f32.mrf.mxu1 }
 0x144   : > { %v1401_v40 = vpop.f32.mrf.mxu0 }
 0x145   : > { %v794_v41 = vadd.f32 %v1463_v36, %v697_v34  ;;  %v1402_v44 = vadd.f32 %v1401_v40, %v1400_v33  ;;  %v1465_v45 = vpop.f32.mrf.mxu1 }
 0x146   : > { %v1403_v46 = vpop.f32.mrf.mxu0  ;;  %v1466_v49 = vadd.f32 %v1465_v45, %v1464_v37 }
 0x147   : > { %1677 = vtanh.f32 %v794_v41  ;;  %v700_v48 = vadd.f32 %v1402_v44, %v2225_v13  ;;  %v1467_v50 = vpop.f32.mrf.mxu1 }
 0x148   : > { %v1404_v53 = vpop.f32.mrf.mxu0 }
 0x149   : > { %v797_v54 = vadd.f32 %v1466_v49, %v700_v48  ;;  %v1405_v55 = vadd.f32 %v1404_v53, %v1403_v46  ;;  %v1468_v58 = vpop.f32.mrf.mxu1 }
 0x14a   : > { %v1406_v59 = vpop.f32.mrf.mxu0  ;;  %v1469_v1 = vadd.f32 %v1468_v58, %v1467_v50 }
 0x14b   : > { %1679 = vtanh.f32 %v797_v54  ;;  %v705_v60 = vadd.f32 %v1405_v55, %v2225_v13  ;;  %v1470_v4 = vpop.f32.mrf.mxu1 }
 0x14c   : > { %v2233_v5 = vpop.eup %1673  ;;  %v1407_v6 = vpop.f32.mrf.mxu0 }
 0x14d   : > { %864 = vst [vmem:[%s2073_s12] sm:$0xff] %v2233_v5  ;;  %v802_v63 = vadd.f32 %v1469_v1, %v705_v60  ;;  %v1408_v51 = vadd.f32 %v1407_v6, %v1406_v59  ;;  %v1471_v9 = vpop.f32.mrf.mxu1 }
 0x14e   : > { %v1409_v61 = vpop.f32.mrf.mxu0  ;;  %v1472_v14 = vadd.f32 %v1471_v9, %v1470_v4 }
 0x14f   : > { %1681 = vtanh.f32 %v802_v63  ;;  %v708_v43 = vadd.f32 %v1408_v51, %v2225_v13  ;;  %v1473_v15 = vpop.f32.mrf.mxu1 }
 0x150   : > { %v2238_v16 = vpop.eup %1675  ;;  %v1410_v17 = vpop.f32.mrf.mxu0 }
 0x151   : > { %865 = vst [vmem:[%s2073_s12 + $0x8] sm:$0xff] %v2238_v16  ;;  %v805_v18 = vadd.f32 %v1472_v14, %v708_v43  ;;  %v1411_v19 = vadd.f32 %v1410_v17, %v1409_v61  ;;  %v1474_v20 = vpop.f32.mrf.mxu1 }
 0x152   : > { %v1412_v21 = vpop.f32.mrf.mxu0  ;;  %v1475_v23 = vadd.f32 %v1474_v20, %v1473_v15 }
 0x153   : > { %1683 = vtanh.f32 %v805_v18  ;;  %v713_v22 = vadd.f32 %v1411_v19, %v2225_v13  ;;  %v1476_v24 = vpop.f32.mrf.mxu1 }
 0x154   : > { %v2243_v25 = vpop.eup %1677  ;;  %v1413_v26 = vpop.f32.mrf.mxu0 }
 0x155   : > { %866 = vst [vmem:[%s2073_s12 + $0x10] sm:$0xff] %v2243_v25  ;;  %v810_v27 = vadd.f32 %v1475_v23, %v713_v22  ;;  %v1414_v28 = vadd.f32 %v1413_v26, %v1412_v21  ;;  %v1477_v29 = vpop.f32.mrf.mxu1 }
 0x156   : > { %v1415_v30 = vpop.f32.mrf.mxu0  ;;  %v1478_v32 = vadd.f32 %v1477_v29, %v1476_v24 }
 0x157   : > { %1685 = vtanh.f32 %v810_v27  ;;  %v716_v31 = vadd.f32 %v1414_v28, %v2225_v13  ;;  %v1479_v33 = vpop.f32.mrf.mxu1 }
 0x158   : > { %v2248_v34 = vpop.eup %1679  ;;  %v1416_v36 = vpop.f32.mrf.mxu0 }
 0x159   : > { %867 = vst [vmem:[%s2073_s12 + $0x18] sm:$0xff] %v2248_v34  ;;  %v813_v37 = vadd.f32 %v1478_v32, %v716_v31  ;;  %v1417_v40 = vadd.f32 %v1416_v36, %v1415_v30  ;;  %v1480_v41 = vpop.f32.mrf.mxu1 }
 0x15a   : > { %v1418_v44 = vpop.f32.mrf.mxu0  ;;  %v1481_v46 = vadd.f32 %v1480_v41, %v1479_v33 }
 0x15b   : > { %1687 = vtanh.f32 %v813_v37  ;;  %v721_v45 = vadd.f32 %v1417_v40, %v2225_v13  ;;  %v1482_v48 = vpop.f32.mrf.mxu1 }
 0x15c   : > { %v2253_v49 = vpop.eup %1681  ;;  %v1419_v50 = vpop.f32.mrf.mxu0 }
 0x15d   : > { %868 = vst [vmem:[%s2073_s12 + $0x20] sm:$0xff] %v2253_v49  ;;  %v818_v53 = vadd.f32 %v1481_v46, %v721_v45  ;;  %v1420_v54 = vadd.f32 %v1419_v50, %v1418_v44  ;;  %v1483_v55 = vpop.f32.mrf.mxu1 }
 0x15e   : > { %v1421_v58 = vpop.f32.mrf.mxu0  ;;  %v1484_v60 = vadd.f32 %v1483_v55, %v1482_v48 }
 0x15f   : > { %1689 = vtanh.f32 %v818_v53  ;;  %v724_v59 = vadd.f32 %v1420_v54, %v2225_v13  ;;  %v1485_v1 = vpop.f32.mrf.mxu1 }
 0x160   : > { %v2258_v4 = vpop.eup %1683  ;;  %v1422_v6 = vpop.f32.mrf.mxu0 }
 0x161   : > { %869 = vst [vmem:[%s2073_s12 + $0x28] sm:$0xff] %v2258_v4  ;;  %v821_v63 = vadd.f32 %v1484_v60, %v724_v59  ;;  %v1423_v51 = vadd.f32 %v1422_v6, %v1421_v58  ;;  %v1486_v9 = vpop.f32.mrf.mxu1 }
 0x162   : > { %v1424_v61 = vpop.f32.mrf.mxu0  ;;  %v1487_v14 = vadd.f32 %v1486_v9, %v1485_v1 }
 0x163   : > { %1691 = vtanh.f32 %v821_v63  ;;  %v729_v43 = vadd.f32 %v1423_v51, %v2225_v13  ;;  %v1488_v15 = vpop.f32.mrf.mxu1 }
 0x164   : > { %v2263_v17 = vpop.eup %1685  ;;  %v1425_v18 = vpop.f32.mrf.mxu0 }
 0x165   : > { %870 = vst [vmem:[%s2073_s12 + $0x30] sm:$0xff] %v2263_v17  ;;  %v826_v19 = vadd.f32 %v1487_v14, %v729_v43  ;;  %v1426_v20 = vadd.f32 %v1425_v18, %v1424_v61  ;;  %v1489_v21 = vpop.f32.mrf.mxu1 }
 0x166   : > { %v1427_v22 = vpop.f32.mrf.mxu0  ;;  %v1490_v24 = vadd.f32 %v1489_v21, %v1488_v15 }
 0x167   : > { %1693 = vtanh.f32 %v826_v19  ;;  %v732_v23 = vadd.f32 %v1426_v20, %v2225_v13  ;;  %v1491_v26 = vpop.f32.mrf.mxu1 }
 0x168   : > { %v2268_v27 = vpop.eup %1687  ;;  %v1428_v28 = vpop.f32.mrf.mxu0 }
 0x169   : > { %871 = vst [vmem:[%s2073_s12 + $0x38] sm:$0xff] %v2268_v27  ;;  %v829_v29 = vadd.f32 %v1490_v24, %v732_v23  ;;  %v1429_v30 = vadd.f32 %v1428_v28, %v1427_v22  ;;  %v1492_v31 = vpop.f32.mrf.mxu1 }
 0x16a   : > { %v1430_v32 = vpop.f32.mrf.mxu0  ;;  %v1493_v36 = vadd.f32 %v1492_v31, %v1491_v26 }
 0x16b   : > { %1695 = vtanh.f32 %v829_v29  ;;  %v737_v33 = vadd.f32 %v1429_v30, %v2225_v13  ;;  %v1494_v37 = vpop.f32.mrf.mxu1 }
 0x16c   : > { %v1690_v40 = vpop.eup %1689  ;;  %v1431_v41 = vpop.f32.mrf.mxu0 }
 0x16d   : > { %872 = vst [vmem:[%s2073_s12 + $0x40] sm:$0xff] %v1690_v40  ;;  %v834_v44 = vadd.f32 %v1493_v36, %v737_v33  ;;  %v1432_v45 = vadd.f32 %v1431_v41, %v1430_v32  ;;  %v1495_v46 = vpop.f32.mrf.mxu1  ;;  %v1905_v32 = vmov 1966171168  }
 0x16e   : > { %v1433_v48 = vpop.f32.mrf.mxu0  ;;  %v1496_v53 = vadd.f32 %v1495_v46, %v1494_v37  ;;  %v1093_v33 = vunpack.c.l.s4 %v1905_v32 }
 0x16f   : > { %1697 = vtanh.f32 %v834_v44  ;;  %v740_v50 = vadd.f32 %v1432_v45, %v2225_v13  ;;  %v1497_v54 = vpop.f32.mrf.mxu1 }
 0x170   : > { %v1692_v55 = vpop.eup %1691  ;;  %v1434_v58 = vpop.f32.mrf.mxu0  ;;  %v1094_v36 = vunpack.c.0.s8 %v1093_v33 }
 0x171   : > { %873 = vst [vmem:[%s2073_s12 + $0x48] sm:$0xff] %v1692_v55  ;;  %v837_v59 = vadd.f32 %v1496_v53, %v740_v50  ;;  %v1435_v60 = vadd.f32 %v1434_v58, %v1433_v48  ;;  %v1498_v1 = vpop.f32.mrf.mxu1 }
 0x172   : > { %v1436_v6 = vpop.f32.mrf.mxu0  ;;  %v1499_v51 = vadd.f32 %v1498_v1, %v1497_v54 }
 0x173   : > { %1699 = vtanh.f32 %v837_v59  ;;  %v745_v63 = vadd.f32 %v1435_v60, %v2225_v13  ;;  %v1500_v9 = vpop.f32.mrf.mxu1  ;;  %v1075_v60 = vld [vmem:[#allocation10] sm:$0xf] }
 0x174   : > { %v1694_v61 = vpop.eup %1693  ;;  %v1437_v43 = vpop.f32.mrf.mxu0 }
 0x175   : > { %874 = vst [vmem:[%s2073_s12 + $0x50] sm:$0xff] %v1694_v61  ;;  %v842_v14 = vadd.f32 %v1499_v51, %v745_v63  ;;  %v1438_v15 = vadd.f32 %v1437_v43, %v1436_v6  ;;  %v1501_v18 = vpop.f32.mrf.mxu1 }
 0x176   : > { %v1502_v20 = vadd.f32 %v1501_v18, %v1500_v9 }
 0x177   : > { %1701 = vtanh.f32 %v842_v14  ;;  %v748_v19 = vadd.f32 %v1438_v15, %v2225_v13  ;;  %v880_v13 = vld [vmem:[%s2429_s3] sm:$0x1] }
 0x178   : > { %v1696_v21 = vpop.eup %1695 }
 0x179   : > { %875 = vst [vmem:[%s2073_s12 + $0x58] sm:$0xff] %v1696_v21  ;;  %v845_v22 = vadd.f32 %v1502_v20, %v748_v19 }
 0x17b   : > { %1703 = vtanh.f32 %v845_v22 }
 0x17c   : > { %v1698_v23 = vpop.eup %1697 }
 0x17d   : > { %876 = vst [vmem:[%s2073_s12 + $0x60] sm:$0xff] %v1698_v23 }
 0x180   : > { %v1700_v24 = vpop.eup %1699 }
 0x181   : > { %877 = vst [vmem:[%s2073_s12 + $0x68] sm:$0xff] %v1700_v24 }
 0x184   : > { %v1702_v26 = vpop.eup %1701 }
 0x185   : > { %878 = vst [vmem:[%s2073_s12 + $0x70] sm:$0xff] %v1702_v26 }
 0x188   : > { %v1704_v28 = vpop.eup %1703 }
 0x189   : > { %879 = vst [vmem:[%s2073_s12 + $0x78] sm:$0xff] %v1704_v28  ;;  %1521 = vmatpush3.xpose.msra.mxu0 %v1704_v28 }
 0x18a   : > { %1522 = vmatprep.subr.mxu0 %v1902_v38 }
 0x18d   : > { %1523 = vmatpush3.xpose.msra.mxu0 %v1702_v26 }
 0x18e   : > { %1524 = vmatprep.subr.mxu0 %v1902_v38 }
 0x191   : > { %1525 = vmatpush3.xpose.msra.mxu0 %v1700_v24 }
 0x192   : > { %1526 = vmatprep.subr.mxu0 %v1902_v38 }
 0x195   : > { %1527 = vmatpush3.xpose.msra.mxu0 %v1698_v23 }
 0x196   : > { %1528 = vmatprep.subr.mxu0 %v1902_v38 }
 0x199   : > { %1529 = vmatpush3.xpose.msra.mxu0 %v1696_v21 }
 0x19a   : > { %1530 = vmatprep.subr.mxu0 %v1902_v38 }
 0x19d   : > { %1531 = vmatpush3.xpose.msra.mxu0 %v1694_v61 }
 0x19e   : > { %1532 = vmatprep.subr.mxu0 %v1902_v38 }
 0x1a1   : > { %1533 = vmatpush3.xpose.msra.mxu0 %v1692_v55 }
 0x1a2   : > { %1534 = vmatprep.subr.mxu0 %v1902_v38 }
 0x1a5   : > { %1535 = vmatpush3.xpose.msra.mxu0 %v1690_v40 }
 0x1a6   : > { %1536 = vmatprep.subr.mxu0 %v1902_v38 }
 0x1a9   : > { %1537 = vmatpush3.xpose.msra.mxu0 %v2268_v27  ;;  %v979_v27 = vld [vmem:[#allocation3] sm:$0x1] }
 0x1aa   : > { %1538 = vmatprep.subr.mxu0 %v1902_v38 }
 0x1ad   : > { %1539 = vmatpush3.xpose.msra.mxu0 %v2263_v17 }
 0x1ae   : > { %1540 = vmatprep.subr.mxu0 %v1902_v38 }
 0x1b1   : > { %1541 = vmatpush3.xpose.msra.mxu0 %v2258_v4 }
 0x1b2   : > { %1542 = vmatprep.subr.mxu0 %v1902_v38 }
 0x1b5   : > { %1543 = vmatpush3.xpose.msra.mxu0 %v2253_v49 }
 0x1b6   : > { %1544 = vmatprep.subr.mxu0 %v1902_v38 }
 0x1b9   : > { %1545 = vmatpush3.xpose.msra.mxu0 %v2248_v34 }
 0x1ba   : > { %1546 = vmatprep.subr.mxu0 %v1902_v38 }
 0x1bd   : > { %1547 = vmatpush3.xpose.msra.mxu0 %v2243_v25 }
 0x1be   : > { %1548 = vmatprep.subr.mxu0 %v1902_v38 }
 0x1c1   : > { %1549 = vmatpush3.xpose.msra.mxu0 %v2238_v16 }
 0x1c2   : > { %1550 = vmatprep.subr.mxu0 %v1902_v38 }
 0x1c5   : > { %1551 = vmatpush3.xpose.msra.mxu0 %v2233_v5 }
 0x1c6   : > { %1034 = vmatprep.subr.bf16.mxu0 %v2209_v8 }
 0x1c8   : > { %1553 = vmatmul.mubr.f32.vlgmr.msra.gmra.mxu0 %v880_v13 }
 0x1c9   : > { %1035 = vmatpush1.bf16.msra.mxu0 %v2217_v11 }
 0x1ca   : > { %1036 = vmatprep.subr.bf16.mxu0 %v2195_v3 }
 0x1cd   : > { %1037 = vmatpush1.bf16.msra.mxu0 %v2207_v7 }
 0x1ce   : > { %1038 = vmatprep.subr.bf16.mxu0 %v2184_v57  ;;  %v952_v57 = vlaneseq }
 0x1d0   : > { %v973_v7 = vshrl.u32 %v952_v57, 7  ;;  %vm2341_vm6 = vcmp.lt.s32.totalorder %v952_v57, 512 }
 0x1d1   : > { %1039 = vmatpush1.bf16.msra.mxu0 %v2193_v2 }
 0x1d2   : > { %1040 = vmatprep.subr.bf16.mxu0 %v2170_v39  ;;  %v953_v39 = vand.u32 127, %v952_v57  ;;  %v2333_v8 = vsub.s32 0, %v973_v7  ;;  %v1097_v41 = vsub.s32 %v1094_v36, %v973_v7 }
 0x1d5   : > { %1041 = vmatpush1.bf16.msra.mxu0 %v2182_v56  ;;  %v954_v56 = vstv %s1352_s8 }
 0x1d6   : > { %1042 = vmatprep.subr.bf16.mxu0 %v2139_v12  ;;  %v955_v12 = vadd.s32 %v954_v56, %v953_v39 }
 0x1d8   : > { %vm956_vm3 = vcmp.lt.s32.totalorder %v955_v12, 200 }
 0x1d9   : > { %1043 = vmatpush1.bf16.msra.mxu0 %v2168_v35 }
 0x1da   : > { %1044 = vmatprep.subr.bf16.mxu0 %v2121_v0 }
 0x1dd   : > { %1045 = vmatpush1.bf16.msra.mxu0 %v2137_v10 }
 0x1de   : > { %1046 = vmatprep.subr.bf16.mxu0 %v2102_v52 }
 0x1e1   : > { %1047 = vmatpush1.bf16.msra.mxu0 %v2117_v62  ;;  %v1904_v62 = vmov 0  }
 0x1e2   : > { %1048 = vmatprep.subr.bf16.mxu0 %v2085_v42  ;;  %1639 = vset.pattern.permute.xlu0 %v1904_v62  ;;  %v958_v42 = vld [vmem:[#allocation2] sm:$0x1] }
 0x1e3   : > { %1025 = vmatprep.mubr.bf16.mxu1 %v1904_v62  ;;  %1066 = vmatprep.mubr.bf16.mxu0 %v1904_v62 }
 0x1e4   : > { %1640 = vset.pattern.permute.xlu1 %v1904_v62 }
 0x1e5   : > { %1049 = vmatpush1.bf16.msra.mxu0 %v2093_v47 }
 0x288   : > { %v947_v35 = vpop.f32.mrf.mxu0 }
 0x289   : > { %v957_v0 = vsel %vm956_vm3, %v947_v35, -1e+30 }
 0x28a   : > { %v1554_v10 = vpop.f32.mrf.mxu0  ;;  %v960_v52 = vsel %vm959_vm4, %v957_v0, -inf }
 0x28b   : > { %961 = vmax.xlane.f32.xlu0 %v960_v52 }
 0x314   : > { %v962_v47 = vpop.xlane.xlu0 %961 }
 0x315   : > { %v963_v2 = vmax.f32 %v958_v42, %v962_v47 }
 0x317   : > { %v964_v3 = vsub.f32 %v958_v42, %v963_v2  ;;  %987 = vst.msk [vmem:[#allocation2] sm:$0x1] %vm985_vm5, %v963_v2  ;;  %1373 = vst.msk [vmem:[%s1371_s7 - $0x1] sm:$0x1] %vm985_vm5, %v963_v2  ;;  %969 = vperm.xlu0 %1639, %v963_v2  }
 0x319   : > { %v965_v34 = vmul.f32 1.442695, %v964_v3 }
 0x392   : > { %v970_v11 = vpop.permute.xlu0 %969 }
 0x393   : > { %v975_v38 = vrot.slane %v970_v11, %v2333_v8 }
 0x395   : > { %v976_v5 = vsub.f32 %v957_v0, %v975_v38 }
 0x397   : > { %v977_v16 = vmul.f32 1.442695, %v976_v5 }
 0x399   : > { %1705 = vpow2.f32 %v977_v16 }
 0x39a   : > { %1707 = vpow2.f32 %v965_v34 }
 0x3a6   : > { %v1706_v25 = vpop.eup %1705 }
 0x3a7   : > { %1370 = vst [vmem:[%s1368_s15 - $0x1] sm:$0x1] %v1706_v25  ;;  %v981_v49 = vsel %vm959_vm4, %v1706_v25, 0.0  ;;  %v992_v4 = vpack.c.bf16 %v1706_v25, %v1706_v25  ;;  %v1708_v17 = vpop.eup %1707 }
 0x3a8   : > { %982 = vadd.xlane.f32.xlu1 %v981_v49  ;;  %v980_v29 = vmul.f32 %v1708_v17, %v979_v27 }
 0x3a9   : > { %1026 = vmatmul.mubr.bf16.vlgmr.msra.gmra.mxu1 %v992_v4  ;;  %1067 = vmatmul.mubr.bf16.vlgmr.msra.gmra.mxu0 %v992_v4 }
 0x3b9   : > { %1078 = vperm.xlu1 %1640, %v1708_v17  }
 0x431   : > { %v983_v30 = vpop.xlane.xlu1 %982 }
 0x432   : > { %v984_v31 = vadd.f32 %v983_v30, %v980_v29 }
 0x434   : > { %986 = vst.msk [vmem:[#allocation3] sm:$0x1] %vm985_vm5, %v984_v31 }
 0x435   : > { %v1079_v44 = vpop.permute.xlu1 %1078 }
 0x436   : > { %v1084_v55 = vrot.slane %v1079_v44, %v2333_v8 }
 0x438   : > { %v1085_v51 = vmul.f32 %v1084_v55, %v1075_v60 }
 0x469   : > { %v1027_v37 = vpop.f32.mrf.mxu1  ;;  %v1068_v40 = vpop.f32.mrf.mxu0 }
 0x46b   : > { %v1029_v45 = vpop.f32.mrf.mxu1  ;;  %v1070_v46 = vpop.f32.mrf.mxu0 }
 0x46c   : > { %v1090_v48 = vcombine.low %v1027_v37, %v1029_v45  ;;  %v1091_v50 = vcombine.low %v1068_v40, %v1070_v46 }
 0x46d   : > { %v1031_v53 = vpop.f32.mrf.mxu1  ;;  %v1072_v54 = vpop.f32.mrf.mxu0 }
 0x46e   : > { %v1098_v58 = vrot.slane %v1090_v48, %v1097_v41  ;;  %v1105_v59 = vrot.slane %v1091_v50, %v1097_v41 }
 0x46f   : > { %v1032_v1 = vpop.f32.mrf.mxu1  ;;  %v1073_v6 = vpop.f32.mrf.mxu0 }
 0x470   : > { %v1106_v63 = vcombine.low %v1098_v58, %v1105_v59 }
 0x472   : > { %v1113_v9 = vrot.slane %v1106_v63, %v1097_v41  ;;  %1124 = sbr.rel (%p1355_p12) target bundleno = 1292 (0x50c), region = 52 }
 0x474   : > { %v1115_v43 = vadd.f32 %v1113_v9, %v1085_v51 }
 0x476   : > { %1120 = vst.msk [vmem:[#allocation10] sm:$0xf] %vm2341_vm6, %v1115_v43 }
 0x477   : > { %v1125_v14 = vld [vmem:[#allocation3] sm:$0x1]  ;;  %v1139_v15 = vld [vmem:[#allocation4] sm:$0x3]  ;;  %v1906_v18 = vmov 0  }
 0x478   : > { %1709 = vset.pattern.permute.xlu0 %v1906_v18  ;;  %1710 = vrcp.f32 %v1125_v14  ;;  %v1356_v19 = vld [vmem:[#allocation2] ss:$0 sm:$0xff]  ;;  %v1156_v56 = vld [vmem:[#allocation11] sm:$0x3] }
 0x479   : > { %v1147_v20 = vsub.f32 %v1139_v15, %v1356_v19 }
 0x47b   : > { %v1148_v21 = vmul.f32 1.442695, %v1147_v20 }
 0x47d   : > { %1712 = vpow2.f32 %v1148_v21  ;;  %v1127_v28 = vld [vmem:[#allocation10] sm:$0xf] }
 0x485   : > { %v1711_v22 = vpop.eup %1710 }
 0x486   : > { %1130 = vperm.xlu0 %1709, %v1711_v22   ;;  %v1153_v23 = vrot.slane %v1711_v22, %v2333_v8 }
 0x48a   : > { %v1713_v24 = vpop.eup %1712 }
 0x48b   : > { %v1155_v26 = vmul.f32 %v1713_v24, %v1153_v23 }
 0x48d   : > { %1159 = vperm.xlu0 %1709, %v1155_v26  }
 0x501   : > { %v1131_v13 = vpop.permute.xlu0 %1130 }
 0x502   : > { %v1136_v57 = vrot.slane %v1131_v13, %v2333_v8 }
 0x504   : > { %v1137_v39 = vmul.f32 %v1136_v57, %v1127_v28 }
 0x506   : > { %1138 = vst.msk [vmem:[#allocation10] sm:$0xf] %vm2341_vm6, %v1137_v39 }
 0x508   : > { %v1160_v12 = vpop.permute.xlu0 %1159 }
 0x509   : > { %v1162_v35 = vmul.f32 %v1160_v12, %v1156_v56 }
 0x50b   : > { %1163 = vst [vmem:[#allocation11] sm:$0x3] %v1162_v35 }
 0x50c PF: > { %s1907_s14 = smov [#allocation10]   ;;  %s1908_s20 = smov [#allocation11]  }
 0x50d   : > { %s1176_s16 = sshll.u32 %s1907_s14, 4  ;;  %s1187_s21 = sshll.u32 %s1908_s20, 4  ;;  %s1177_s16 = int_to_ptr.vmem [resolvable:$true] %s1176_s16  ;;  %s1188_s21 = int_to_ptr.vmem [resolvable:$true] %s1187_s21 }
 0x50e   : > { %s1768_s30 = scalar_lea.vmem %s1177_s16, 64  ;;  %p2451_p8 = scmp.eq.s32.totalorder %s1966_s25, 1 }
 0x50f   : > { %p1769_p7 = scmp.ne.s32.totalorder %s1177_s16, %s1768_s30  ;;  %p1775_p13 = scmp.lt.s32.totalorder %s1177_s16, %s1177_s16 }
 0x510   : > { %p1776_p0 = scmp.lt.s32.totalorder %s1768_s30, %s1768_s30 }
 0x511   : > { %p1770_p11 = pnand %p1769_p7, %p2451_p8 }
 0x512   : > { %p1777_p5 = por %p1776_p0, %p1775_p13 }
 0x513   : > { %p1771_p2 = pneg %p1770_p11 }
 0x515   : > { %p1778_p10 = pnand %p1777_p5, %p1771_p2 }
 0x517   : > { %1781 = shalt.err (!%p1778_p10)
}
 0x518   : > { %p2452_p1 = pmov %p2451_p8  ;;  %s1792_s27 = scalar_lea.vmem %s1188_s21, 32 }
 0x519   : > { %p1793_p4 = scmp.ne.s32.totalorder %s1188_s21, %s1792_s27  ;;  %p1799_p12 = scmp.lt.s32.totalorder %s1188_s21, %s1188_s21 }
 0x51a   : > { %1562 = dma.vmem_to_hbm [thread:$0]  (%p2452_p1), %s1177_s16, 64, %s2430_s4, [#allocation7]  }
 0x51b   : > { %p2453_p6 = pmov %p2452_p1  ;;  %p1800_p7 = scmp.lt.s32.totalorder %s1792_s27, %s1792_s27 }
 0x51d   : > { %p1794_p9 = pnand %p1793_p4, %p2453_p6  ;;  %p1801_p8 = por %p1800_p7, %p1799_p12 }
 0x51f   : > { %p1795_p3 = pneg %p1794_p9 }
 0x521   : > { %p1802_p11 = pnand %p1801_p8, %p1795_p3 }
 0x523   : > { %1805 = shalt.err (!%p1802_p11)
}
 0x524   : > { %p2454_p2 = pmov %p2452_p1  ;;  %s1164_s13 = sand.u32 1, %s1966_s25  }
 0x525   : > { %s1374_s8 = sshll.u32 %s1966_s25, 11  ;;  %s1200_s16 = sshll.u32 %s2073_s12, 4  ;;  %s2374_s16 = int_to_ptr.vmem [resolvable:$true] %s1200_s16 }
 0x526   : > { %1564 = dma.vmem_to_hbm [thread:$0]  (%p2454_p2), %s1188_s21, 32, %s2431_s5, [#allocation12]  }
 0x527   : > { %s2371_s14 = scalar_lea.hbm %s2432_s6, %s1374_s8  ;;  %s2376_s20 = scalar_lea.sflag [#allocation7], %s1164_s13 }
 0x528   : > { %s1816_s30 = scalar_lea.vmem %s2374_s16, 2048  ;;  %p2455_p0 = scmp.ne.s32.totalorder %s2442_s18, 0 }
 0x529   : > { %p1817_p13 = scmp.ne.s32.totalorder %s2374_s16, %s1816_s30  ;;  %s1909_s21 = smov [#allocation13]  }
 0x52a   : > { %s1820_s19 = sshll.u32 %s1909_s21, 4  ;;  %s1821_s19 = int_to_ptr.vmem [resolvable:$false] %s1820_s19 }
 0x52b   : > { %p1818_p5 = pnand %p1817_p13, %p2455_p0  ;;  %s1822_s29 = scalar_lea.vmem %s1821_s19, 4096 }
 0x52c   : > { %p1823_p1 = scmp.lt.s32.totalorder %s2374_s16, %s1821_s19  ;;  %p1824_p4 = scmp.lt.s32.totalorder %s1822_s29, %s1816_s30 }
 0x52d   : > { %p1819_p10 = pneg %p1818_p5 }
 0x52e   : > { %p1825_p6 = por %p1824_p4, %p1823_p1 }
 0x530   : > { %p1826_p9 = pnand %p1825_p6, %p1819_p10 }
 0x532   : > { %1829 = shalt.err (!%p1826_p9)
}
 0x533   : > { %s1830_s12 = scalar_lea.hbm %s2371_s14, 2048  ;;  %s1834_s11 = scalar_lea.hbm %s2432_s6, 4096 }
 0x534   : > { %p1831_p3 = scmp.ne.s32.totalorder %s2371_s14, %s1830_s12  ;;  %p1835_p8 = scmp.lt.s32.totalorder %s2371_s14, %s2432_s6 }
 0x535   : > { %p1836_p11 = scmp.lt.s32.totalorder %s1834_s11, %s1830_s12 }
 0x536   : > { %p1832_p12 = pnand %p1831_p3, %p2455_p0 }
 0x537   : > { %p1837_p2 = por %p1836_p11, %p1835_p8 }
 0x538   : > { %p1833_p7 = pneg %p1832_p12 }
 0x53a   : > { %p1838_p13 = pnand %p1837_p2, %p1833_p7 }
 0x53c   : > { %1841 = shalt.err (!%p1838_p13)
}
 0x53d   : > { %s1910_s7 = smov 128   ;;  %s1911_s15 = smov 8  }
 0x53e   : > { %1565 = dma.vmem_to_hbm [thread:$0]  (%p2455_p0), %s2374_s16, 2048, %s2371_s14, %s2376_s20, %s1910_s7, %s1910_s7, %s1911_s15  }
 0x53f   : > { %p2456_p5 = scmp.eq.s32.totalorder %s1966_s25, 1 }
 0x541   : > { %1867 = dma.done.wait (%p2456_p5), [#allocation7], 64   ;;  %p2457_p10 = pmov %p2456_p5 }
 0x542   : > { %p2458_p1 = pmov %p2456_p5 }
 0x543   : > { %1869 = vsyncadd (%p2457_p10), [#allocation7], 4294967232 }
 0x544   : > { %1871 = dma.done.wait (%p2458_p1), [#allocation12], 32   ;;  %p2459_p4 = pmov %p2458_p1 }
 0x546   : > { %1873 = vsyncadd (%p2459_p4), [#allocation12], 4294967264 }
 0x547 PF: > { %s1223_s30 = sand.u32 1, %s1306_s26   ;;  %p2460_p6 = scmp.ne.s32.totalorder %s2438_s28, 0 }
 0x548   : > { %p2461_p9 = scmp.ge.s32.totalorder %s1892_s24, 2  ;;  %s1224_s18 = scalar_lea.sflag [#allocation7], %s1223_s30 }
 0x54a   : > { %p1580_p0 = pnand %p2461_p9, %p2460_p6 }
 0x54c   : > { %p1581_p3 = pneg %p1580_p0 }
 0x54e   : > { %1875 = dma.done.wait (%p1581_p3), %s1224_s18, 2048  }
 0x54f   : > { %1877 = vsyncadd (%p1581_p3), %s1224_s18, 4294965248  ;;  %p20_p12 = scmp.ge.s32.totalorder %s2001_s9, 4   ;;  %s2462_s21 = smov %s1884_s22 }
 0x550   : > { %s2463_s22 = smov %s1888_s23  ;;  %s2464_s23 = smov %s2018_s17 }
 0x551   : > { %s2465_s24 = smov %s2001_s9  ;;  %22 = sbr.rel (!%p20_p12) target bundleno = 6 (0x6), region = 110 }
 0x556   :  { %1229 = vsyncpa [#allocation6], 1 }
 0x557   :  { %1231 = vsyncpa [#allocation6 + $0x1], 1 }
 0x558   :  { %1232 = vsyncpa [#allocation9], 1 }
 0x559   :  { %1233 = vsyncpa [#allocation7], 1 }
 0x55a   :  { %1235 = vsyncpa [#allocation7 + $0x1], 1 }
 0x55b   :  { %1236 = vsyncpa [#allocation12], 1 }

</bundles_post_ra>
